<compile_context>
chip_gen: v5e
topology: v5e:2x2
jax: 0.10.0
libtpu: 0.0.40
codegen_flags: <defaults>
</compile_context>

<pallas_src>
import jax
import jax.numpy as jnp
from jax.experimental import pallas as pl
from jax.experimental.pallas import tpu as pltpu

LANE = 128


# ------------------------------ small helpers ------------------------------ #
def _round_up(x, m):
    return ((x + m - 1) // m) * m


def _pad2(x, rows, cols):
    r, c = x.shape
    return jnp.pad(x, ((0, rows - r), (0, cols - c)))


def _device_vmem_cap():
    # ~80% of physical VMEM (128 MiB on v5e/v6e, 64 MiB per-TC on v7x).
    try:
        return int(0.8 * int(pltpu.get_tpu_info().vmem_capacity_bytes))
    except Exception:
        return int(0.8 * (64 << 20))  # conservative v7x fallback


def _vmem_limit(streamed, resident, cap):
    # Streamed blocks are double-buffered by the pipeline; resident blocks
    # (constant index_map) and the accumulator are single-buffered.
    need = 2 * sum(int(b) for b in streamed) + sum(int(b) for b in resident)
    return int(min(cap, max(need + (4 << 20), 8 << 20)))


def _choose_tiles(n, tm, tk):
    """Power-of-two tiles so n_pad is divisible by both tm (rows) and tk (K)."""
    tm = max(16, pl.next_power_of_2(int(tm)))      # sublane tile (bf16 packs 16)
    tk = max(LANE, pl.next_power_of_2(int(tk)))    # lane / reduction tile
    n_cap = pl.next_power_of_2(max(int(n), LANE))
    tm = min(tm, n_cap)
    tk = min(tk, n_cap)
    n_pad = _round_up(n, max(tm, tk))
    return tm, tk, n_pad


# ----------------------------- Pallas kernels ------------------------------ #
def _agg1_fused_kernel(a_ref, xw1_ref, b1_ref, wcat_ref, xw2_ref, acc_ref):
    """acc += A_tile @ XW1_tile; epilogue: xw2 = relu(acc + b1) @ W_cat."""
    k = pl.program_id(1)

    @pl.when(k == 0)
    def _():
        acc_ref[...] = jnp.zeros_like(acc_ref)

    acc_ref[...] += jnp.dot(a_ref[...], xw1_ref[...],
                            preferred_element_type=jnp.float32)

    @pl.when(k == pl.num_programs(1) - 1)
    def _():
        h = jnp.maximum(acc_ref[...] + b1_ref[...], 0.0)          # f32 epilogue
        xw2_ref[...] = jnp.dot(h.astype(wcat_ref.dtype), wcat_ref[...],
                               preferred_element_type=jnp.float32
                               ).astype(xw2_ref.dtype)


def _agg2_kernel(a_ref, xw2_ref, bcat_ref, o_ref, acc_ref):
    """acc += A_tile @ XW2_tile; epilogue: out = acc + [b_mu | b_logstd]."""
    k = pl.program_id(1)

    @pl.when(k == 0)
    def _():
        acc_ref[...] = jnp.zeros_like(acc_ref)

    acc_ref[...] += jnp.dot(a_ref[...], xw2_ref[...],
                            preferred_element_type=jnp.float32)

    @pl.when(k == pl.num_programs(1) - 1)
    def _():
        o_ref[...] = (acc_ref[...] + bcat_ref[...]).astype(o_ref.dtype)


# ----------------------------- Pallas wrappers ------------------------------ #
def _agg1_fused_call(a_bf16, xw1_bf16, b1_f32, wcat_bf16, *, tm, tk, vmem_cap):
    n_pad = a_bf16.shape[0]
    hid_pad = xw1_bf16.shape[1]
    out_pad = wcat_bf16.shape[1]
    grid = (n_pad // tm, n_pad // tk)
    vmem = _vmem_limit(
        streamed=[tm * tk * 2, tk * hid_pad * 2, tm * out_pad * 2],
        resident=[hid_pad * 4, hid_pad * out_pad * 2, tm * hid_pad * 4],
        cap=vmem_cap)
    return pl.pallas_call(
        _agg1_fused_kernel,
        out_shape=jax.ShapeDtypeStruct((n_pad, out_pad), jnp.bfloat16),
        grid_spec=pltpu.PrefetchScalarGridSpec(
            num_scalar_prefetch=0,
            grid=grid,
            in_specs=[
                pl.BlockSpec((tm, tk), lambda i, k: (i, k)),            # A_hat (streamed)
                pl.BlockSpec((tk, hid_pad), lambda i, k: (k, 0)),       # XW1 (streamed over K)
                pl.BlockSpec((1, hid_pad), lambda i, k: (0, 0)),        # b1 (resident)
                pl.BlockSpec((hid_pad, out_pad), lambda i, k: (0, 0)),  # W_cat (resident)
            ],
            out_specs=pl.BlockSpec((tm, out_pad), lambda i, k: (i, 0)),
            scratch_shapes=[pltpu.VMEM((tm, hid_pad), jnp.float32)],
        ),
        compiler_params=pltpu.CompilerParams(
            dimension_semantics=("parallel", "arbitrary"),
            vmem_limit_bytes=vmem),
        cost_estimate=pl.CostEstimate(
            flops=2 * n_pad * n_pad * hid_pad + 2 * n_pad * hid_pad * out_pad,
            transcendentals=0,
            bytes_accessed=int(a_bf16.size * 2 + xw1_bf16.size * 2
                               + wcat_bf16.size * 2 + hid_pad * 4
                               + n_pad * out_pad * 2)),
    )(a_bf16, xw1_bf16, b1_f32, wcat_bf16)


def _agg2_call(a_bf16, xw2_bf16, bcat_f32, *, tm, tk, vmem_cap):
    n_pad = a_bf16.shape[0]
    out_pad = xw2_bf16.shape[1]
    grid = (n_pad // tm, n_pad // tk)
    vmem = _vmem_limit(
        streamed=[tm * tk * 2, tk * out_pad * 2, tm * out_pad * 4],
        resident=[out_pad * 4, tm * out_pad * 4],
        cap=vmem_cap)
    return pl.pallas_call(
        _agg2_kernel,
        out_shape=jax.ShapeDtypeStruct((n_pad, out_pad), jnp.float32),
        grid_spec=pltpu.PrefetchScalarGridSpec(
            num_scalar_prefetch=0,
            grid=grid,
            in_specs=[
                pl.BlockSpec((tm, tk), lambda i, k: (i, k)),        # A_hat (streamed)
                pl.BlockSpec((tk, out_pad), lambda i, k: (k, 0)),   # XW2 (streamed over K)
                pl.BlockSpec((1, out_pad), lambda i, k: (0, 0)),    # b_cat (resident)
            ],
            out_specs=pl.BlockSpec((tm, out_pad), lambda i, k: (i, 0)),
            scratch_shapes=[pltpu.VMEM((tm, out_pad), jnp.float32)],
        ),
        compiler_params=pltpu.CompilerParams(
            dimension_semantics=("parallel", "arbitrary"),
            vmem_limit_bytes=vmem),
        cost_estimate=pl.CostEstimate(
            flops=2 * n_pad * n_pad * out_pad,
            transcendentals=0,
            bytes_accessed=int(a_bf16.size * 2 + xw2_bf16.size * 2
                               + out_pad * 4 + n_pad * out_pad * 4)),
    )(a_bf16, xw2_bf16, bcat_f32)


# ------------------------------ JAX glue ----------------------------------- #
def normalized_adjacency_padded(edge_index, num_nodes, n_pad, dtype=jnp.bfloat16):
    """PyG gcn_norm, built directly at padded shape: one scatter + one cast."""
    src = edge_index[0]
    dst = edge_index[1]
    loop = jnp.arange(num_nodes, dtype=edge_index.dtype)
    src = jnp.concatenate([src, loop])
    dst = jnp.concatenate([dst, loop])
    w = jnp.ones(src.shape[0], dtype=jnp.float32)
    deg = jnp.zeros((num_nodes,), dtype=jnp.float32).at[dst].add(w)
    dinv = jnp.where(deg > 0, 1.0 / jnp.sqrt(deg), 0.0)
    norm = dinv[dst] * dinv[src] * w
    # message flows source -> target; aggregation at target (row = dst, col = src)
    a = jnp.zeros((n_pad, n_pad), dtype=jnp.float32).at[dst, src].add(norm)
    return a.astype(dtype)


def precompute_a_hat(edge_index, num_nodes, *, tm=256, tk=2048):
    """PyG cached=True semantics: build the padded bf16 adjacency once, reuse."""
    _, _, n_pad = _choose_tiles(num_nodes, tm, tk)
    return normalized_adjacency_padded(edge_index, num_nodes, n_pad)


def glorot(key, shape):
    fan_in, fan_out = shape
    limit = jnp.sqrt(6.0 / (fan_in + fan_out))
    return jax.random.uniform(key, shape, jnp.float32, -limit, limit)


def init_params(key, in_channels, embedding_dim):
    k1, k2, k3 = jax.random.split(key, 3)
    hidden = 2 * embedding_dim
    return {
        "w1": glorot(k1, (in_channels, hidden)),
        "b1": jnp.zeros((hidden,), jnp.float32),
        "w_mu": glorot(k2, (hidden, embedding_dim)),
        "b_mu": jnp.zeros((embedding_dim,), jnp.float32),
        "w_ls": glorot(k3, (hidden, embedding_dim)),
        "b_ls": jnp.zeros((embedding_dim,), jnp.float32),
    }


def variational_gcn_encoder(params, x, edge_index, *, tm=256, tk=2048, a_hat=None):
    """Forward pass: returns (mu, logstd), each [N, embedding_dim]."""
    n, f_in = x.shape
    hidden = params["w1"].shape[1]
    emb = params["w_mu"].shape[1]

    tm, tk, n_pad = _choose_tiles(n, tm, tk)
    hid_pad = _round_up(hidden, LANE)      # lane-dense hidden features
    out_pad = _round_up(2 * emb, LANE)     # lane-dense fused [mu | logstd] slab
    vmem_cap = _device_vmem_cap()

    if a_hat is None:
        a_hat = normalized_adjacency_padded(edge_index, n, n_pad)
    assert a_hat.shape == (n_pad, n_pad) and a_hat.dtype == jnp.bfloat16

    # Layer-1 XW: K = f_in is tiny (~in_channels), plain JAX / XLA is the right tool.
    x_pad = jnp.pad(x, ((0, n_pad - n), (0, 0))).astype(jnp.bfloat16)
    w1 = _pad2(params["w1"], f_in, hid_pad).astype(jnp.bfloat16)
    xw1 = jnp.dot(x_pad, w1, preferred_element_type=jnp.float32).astype(jnp.bfloat16)

    b1 = jnp.pad(params["b1"], (0, hid_pad - hidden)).reshape(1, hid_pad).astype(jnp.float32)

    # Fuse mu / logstd heads: A_hat is read once per layer for both.
    w_cat = jnp.concatenate([params["w_mu"], params["w_ls"]], axis=1)
    w_cat = _pad2(w_cat, hid_pad, out_pad).astype(jnp.bfloat16)
    b_cat = jnp.concatenate([params["b_mu"], params["b_ls"]])
    b_cat = jnp.pad(b_cat, (0, out_pad - 2 * emb)).reshape(1, out_pad).astype(jnp.float32)

    # AGG1 (+ReLU) fused with XW2:  xw2 = relu(A_hat @ XW1 + b1) @ [W_mu|W_ls]
    # (h never touches HBM; padded rows of xw2 are harmless because the matching
    #  A_hat columns are zero).
    xw2 = _agg1_fused_call(a_hat, xw1, b1, w_cat, tm=tm, tk=tk, vmem_cap=vmem_cap)

    # AGG2:  out = A_hat @ XW2 + [b_mu|b_ls]
    out = _agg2_call(a_hat, xw2, b_cat, tm=tm, tk=tk, vmem_cap=vmem_cap)

    mu = out[:n, :emb]
    logstd = out[:n, emb:2 * emb]
    return mu, logstd


# ------------------------------ references --------------------------------- #
def _reference_f32(params, x, edge_index):
    n = x.shape[0]
    a_hat = normalized_adjacency_padded(edge_index, n, n, dtype=jnp.float32)
    h = jnp.maximum(a_hat @ (x @ params["w1"]) + params["b1"], 0.0)
    mu = a_hat @ (h @ params["w_mu"]) + params["b_mu"]
    logstd = a_hat @ (h @ params["w_ls"]) + params["b_ls"]
    return mu, logstd


def _reference_bf16(params, x, edge_index):
    # Mirrors the kernel's bf16-input / f32-accumulate matmul chain.
    bf16, f32 = jnp.bfloat16, jnp.float32

    def mm(p, q):
        return jax.lax.dot(p.astype(bf16), q.astype(bf16), preferred_element_type=f32)

    n = x.shape[0]
    a_hat = normalized_adjacency_padded(edge_index, n, n, dtype=bf16)
    xw1 = mm(x, params["w1"]).astype(bf16)
    h = jnp.maximum(mm(a_hat, xw1) + params["b1"], 0.0)
    w_cat = jnp.concatenate([params["w_mu"], params["w_ls"]], axis=1)
    b_cat = jnp.concatenate([params["b_mu"], params["b_ls"]])
    xw2 = mm(h, w_cat).astype(bf16)
    out = mm(a_hat, xw2) + b_cat
    emb = params["w_mu"].shape[1]
    return out[:, :emb], out[:, emb:]


# -------------------------------- main -------------------------------------- #
if __name__ == "__main__":
    key = jax.random.PRNGKey(0)
    k_feat, k_edge, k_param = jax.random.split(key, 3)

    num_nodes = 200
    in_channels = 8
    embedding_dim = 4
    num_edges = 600

    # Small tiles so the demo exercises both grid axes: n_pad=256 -> grid=(4, 2).
    tm, tk = 64, 128

    x = jax.random.normal(k_feat, (num_nodes, in_channels), jnp.float32)
    edge_index = jax.random.randint(
        k_edge, (2, num_edges), 0, num_nodes, dtype=jnp.int32
    )
    params = init_params(k_param, in_channels, embedding_dim)

    # PyG cached=True: A_hat built once, reused across forward calls.
    a_hat = precompute_a_hat(edge_index, num_nodes, tm=tm, tk=tk)

    mu, logstd = variational_gcn_encoder(
        params, x, edge_index, tm=tm, tk=tk, a_hat=a_hat
    )
    mu = jax.block_until_ready(mu)
    logstd = jax.block_until_ready(logstd)

    assert mu.shape == (num_nodes, embedding_dim)
    assert logstd.shape == (num_nodes, embedding_dim)

    # Strict check against a bf16-matched reference (same rounding as the kernel).
    mu_b, ls_b = _reference_bf16(params, x, edge_index)
    assert jnp.allclose(mu, mu_b, atol=1e-3, rtol=1e-3)
    assert jnp.allclose(logstd, ls_b, atol=1e-3, rtol=1e-3)

    # Loose semantic check against the pure-f32 module (bf16 rounding tolerance).
    mu_f, ls_f = _reference_f32(params, x, edge_index)
    assert jnp.allclose(mu, mu_f, atol=1e-1, rtol=1e-1)
    assert jnp.allclose(logstd, ls_f, atol=1e-1, rtol=1e-1)

    print("KERNEL_OK")
</pallas_src>

<mosaic_0001>
module attributes {stable_mosaic.version = 11 : i64} {
  func.func @_agg1_fused_kernel(%arg0: i32, %arg1: i32, %arg2: memref<64x128xbf16, #tpu.memory_space<vmem>>, %arg3: memref<128x128xbf16, #tpu.memory_space<vmem>>, %arg4: memref<1x128xf32, #tpu.memory_space<vmem>>, %arg5: memref<128x128xbf16, #tpu.memory_space<vmem>>, %arg6: memref<64x128xbf16, #tpu.memory_space<vmem>>, %arg7: memref<64x128xf32, #tpu.memory_space<vmem>>) attributes {dimension_semantics = [#tpu.dimension_semantics<parallel>, #tpu.dimension_semantics<arbitrary>], iteration_bounds = array<i64: 4, 2>, scalar_prefetch = 0 : i64, scratch_operands = 1 : i64, tpu.core_type = #tpu.core_type<tc>, window_params = [{transform_indices = @transform_0, window_bounds = array<i64: 64, 128>}, {transform_indices = @transform_1, window_bounds = array<i64: 128, 128>}, {pipeline_mode = #tpu.pipeline_mode<synchronous>, transform_indices = @transform_2, window_bounds = array<i64: 1, 128>}, {pipeline_mode = #tpu.pipeline_mode<synchronous>, transform_indices = @transform_3, window_bounds = array<i64: 128, 128>}, {transform_indices = @transform_4, window_bounds = array<i64: 64, 128>}]} {
    %c0_i32 = arith.constant 0 : i32
    %0 = arith.cmpi eq, %arg1, %c0_i32 : i32
    %1 = arith.extui %0 : i1 to i32
    %c0_i32_0 = arith.constant 0 : i32
    %2 = arith.cmpi ne, %1, %c0_i32_0 : i32
    scf.if %2 {
      %cst_9 = arith.constant 0.000000e+00 : f32
      %12 = vector.broadcast %cst_9 : f32 to vector<64x128xf32>
      %c0_10 = arith.constant 0 : index
      %c0_11 = arith.constant 0 : index
      %13 = vector.load %arg7[%c0_10, %c0_11] : memref<64x128xf32, #tpu.memory_space<vmem>>, vector<64x128xf32>
      tpu.vector_store %arg7[%c0_10, %c0_11], %12 {strides = array<i32>} : memref<64x128xf32, #tpu.memory_space<vmem>>, vector<64x128xf32>,
    } else {
    }
    %c0 = arith.constant 0 : index
    %c0_1 = arith.constant 0 : index
    %3 = vector.load %arg7[%c0, %c0_1] : memref<64x128xf32, #tpu.memory_space<vmem>>, vector<64x128xf32>
    %c0_2 = arith.constant 0 : index
    %c0_3 = arith.constant 0 : index
    %4 = vector.load %arg2[%c0_2, %c0_3] : memref<64x128xbf16, #tpu.memory_space<vmem>>, vector<64x128xbf16>
    %c0_4 = arith.constant 0 : index
    %c0_5 = arith.constant 0 : index
    %5 = vector.load %arg3[%c0_4, %c0_5] : memref<128x128xbf16, #tpu.memory_space<vmem>>, vector<128x128xbf16>
    %cst = arith.constant dense<0.000000e+00> : vector<64x128xf32>
    %6 = tpu.matmul %4, %5, %cst {dimension_numbers = #tpu.dot_dimension_numbers<[1], [0], [0], [1], [0, 0, 1, 1], [], []>} : vector<64x128xbf16>, vector<128x128xbf16>, vector<64x128xf32> -> vector<64x128xf32>
    %7 = arith.addf %3, %6 : vector<64x128xf32>
    %c0_6 = arith.constant 0 : index
    %c0_7 = arith.constant 0 : index
    %8 = vector.load %arg7[%c0_6, %c0_7] : memref<64x128xf32, #tpu.memory_space<vmem>>, vector<64x128xf32>
    tpu.vector_store %arg7[%c0_6, %c0_7], %7 {strides = array<i32>} : memref<64x128xf32, #tpu.memory_space<vmem>>, vector<64x128xf32>,
    %c1_i32 = arith.constant 1 : i32
    %9 = arith.cmpi eq, %arg1, %c1_i32 : i32
    %10 = arith.extui %9 : i1 to i32
    %c0_i32_8 = arith.constant 0 : i32
    %11 = arith.cmpi ne, %10, %c0_i32_8 : i32
    scf.if %11 {
      %c0_9 = arith.constant 0 : index
      %c0_10 = arith.constant 0 : index
      %12 = vector.load %arg7[%c0_9, %c0_10] : memref<64x128xf32, #tpu.memory_space<vmem>>, vector<64x128xf32>
      %c0_11 = arith.constant 0 : index
      %c0_12 = arith.constant 0 : index
      %13 = vector.load %arg4[%c0_11, %c0_12] : memref<1x128xf32, #tpu.memory_space<vmem>>, vector<1x128xf32>
      %14 = vector.broadcast %13 : vector<1x128xf32> to vector<64x128xf32>
      %15 = arith.addf %12, %14 : vector<64x128xf32>
      %cst_13 = arith.constant 0.000000e+00 : f32
      %16 = vector.broadcast %cst_13 : f32 to vector<64x128xf32>
      %17 = arith.maximumf %15, %16 : vector<64x128xf32>
      %18 = arith.truncf %17 : vector<64x128xf32> to vector<64x128xbf16>
      %c0_14 = arith.constant 0 : index
      %c0_15 = arith.constant 0 : index
      %19 = vector.load %arg5[%c0_14, %c0_15] : memref<128x128xbf16, #tpu.memory_space<vmem>>, vector<128x128xbf16>
      %cst_16 = arith.constant dense<0.000000e+00> : vector<64x128xf32>
      %20 = tpu.matmul %18, %19, %cst_16 {dimension_numbers = #tpu.dot_dimension_numbers<[1], [0], [0], [1], [0, 0, 1, 1], [], []>} : vector<64x128xbf16>, vector<128x128xbf16>, vector<64x128xf32> -> vector<64x128xf32>
      %21 = arith.truncf %20 : vector<64x128xf32> to vector<64x128xbf16>
      %c0_17 = arith.constant 0 : index
      %c0_18 = arith.constant 0 : index
      %22 = vector.load %arg6[%c0_17, %c0_18] : memref<64x128xbf16, #tpu.memory_space<vmem>>, vector<64x128xbf16>
      tpu.vector_store %arg6[%c0_17, %c0_18], %21 {strides = array<i32>} : memref<64x128xbf16, #tpu.memory_space<vmem>>, vector<64x128xbf16>,
    } else {
    }
    return
  }
  func.func @transform_0(%arg0: i32, %arg1: i32) -> (i32, i32) {
    %c0_i32 = arith.constant 0 : i32
    return %arg0, %arg1 : i32, i32
  }
  func.func @transform_1(%arg0: i32, %arg1: i32) -> (i32, i32) {
    %c0_i32 = arith.constant 0 : i32
    %c0_i32_0 = arith.constant 0 : i32
    return %arg1, %c0_i32 : i32, i32
  }
  func.func @transform_2(%arg0: i32, %arg1: i32) -> (i32, i32) {
    %c0_i32 = arith.constant 0 : i32
    %c0_i32_0 = arith.constant 0 : i32
    %c0_i32_1 = arith.constant 0 : i32
    return %c0_i32, %c0_i32_0 : i32, i32
  }
  func.func @transform_3(%arg0: i32, %arg1: i32) -> (i32, i32) {
    %c0_i32 = arith.constant 0 : i32
    %c0_i32_0 = arith.constant 0 : i32
    %c0_i32_1 = arith.constant 0 : i32
    return %c0_i32, %c0_i32_0 : i32, i32
  }
  func.func @transform_4(%arg0: i32, %arg1: i32) -> (i32, i32) {
    %c0_i32 = arith.constant 0 : i32
    %c0_i32_0 = arith.constant 0 : i32
    return %arg0, %c0_i32 : i32, i32
  }
}

</mosaic_0001>

<bundles_post_ra>
// kernel: tpu_custom_call.1
= control target key start
LH: loop header
LB: loop body
LE: loop exit
PB: predicated region body
PF: predicated region fallthrough
CT: control target
= control target key end

     0   :  { %s1656_s0 = inlined_call_operand.hbm [shape: bf16[256,256], index: 0, kind: input, shape index: {}]   ;;  %s1657_s1 = inlined_call_operand.hbm [shape: bf16[256,128], index: 1, kind: input, shape index: {}]   ;;  %s1658_s2 = inlined_call_operand.vmem [shape: f32[1,128], index: 2, kind: input, shape index: {}]   ;;  %s1659_s3 = inlined_call_operand.hbm [shape: bf16[128,128], index: 3, kind: input, shape index: {}]   ;;  %s1660_s4 = inlined_call_operand.hbm [shape: bf16[256,128], index: 4, kind: output, shape index: {}]  }
   0x1   :  { %1675 = sst [smem:[#allocation25_spill]] %s1656_s0 }
   0x2   :  { %1676 = sst [smem:[#allocation26_spill]] %s1658_s2 }
   0x3   :  { %1677 = sst [smem:[#allocation27_spill]] %s1659_s3 }
   0x4   :  { %1678 = sst [smem:[#allocation28_spill]] %s1660_s4 }
   0x5   :  { %9 = vsyncpa [#allocation4], 0 }
   0x6   :  { %11 = vsyncpa [#allocation4 + $0x1], 0 }
   0x7   :  { %12 = vsyncpa [#allocation7], 0 }
   0x8   :  { %14 = vsyncpa [#allocation7 + $0x1], 0 }
   0x9   :  { %15 = vsyncpa [#allocation5], 0 }
   0xa   :  { %17 = vsyncpa [#allocation5 + $0x1], 0  ;;  %s1360_s15 = smov 0   ;;  %s1362_s16 = smov 0  }
   0xb   :  { %s1364_s17 = smov 0   ;;  %s1366_s18 = smov 0  }
   0xc   :  { %s1368_s19 = smov 0   ;;  %s1370_s20 = smov 0  }
   0xd   :  { %s1372_s21 = smov 0   ;;  %s1374_s22 = smov 0  }
   0xe   :  { %s1376_s23 = smov 0   ;;  %s1378_s24 = smov 0  }
   0xf   :  { %s1380_s25 = smov 0   ;;  %s1382_s26 = smov 0  }
  0x10   :  { %s1384_s27 = smov 0   ;;  %s1386_s28 = smov 0  }
  0x11 LB: > { %1679 = sst [smem:[#allocation14_spill]] %s1274_s15  ;;  %s1427_s29 = sadd.s32 4294967295, %s1326_s28   ;;  %s1326_s28 = sphi %s1386_s28, %s23_s28   ;;  %s1322_s27 = sphi %s1384_s27, %s1724_s27   ;;  %s1318_s26 = sphi %s1382_s26, %s1723_s26   ;;  %s1314_s25 = sphi %s1380_s25, %s1722_s25   ;;  %s1310_s24 = sphi %s1378_s24, %s1721_s24   ;;  %s1306_s23 = sphi %s1376_s23, %s1710_s23   ;;  %s1302_s22 = sphi %s1374_s22, %s1720_s22   ;;  %s1298_s21 = sphi %s1372_s21, %s1719_s21   ;;  %s1294_s20 = sphi %s1370_s20, %s1718_s20   ;;  %s1290_s19 = sphi %s1368_s19, %s1717_s19   ;;  %s1286_s18 = sphi %s1366_s18, %s1716_s18   ;;  %s1282_s17 = sphi %s1364_s17, %s1708_s17   ;;  %s1278_s16 = sphi %s1362_s16, %s1715_s16   ;;  %s1274_s15 = sphi %s1360_s15, %s1714_s15  }
  0x12   : > { %1680 = sst [smem:[#allocation15_spill]] %s1282_s17  ;;  %s736_s30 = sadd.s32 4294967294, %s1326_s28  }
  0x13   : > { %1681 = sst [smem:[#allocation16_spill]] %s1306_s23  ;;  %p57_p0 = scmp.ne.s32.totalorder %s1302_s22, %s1298_s21 }
  0x14   : > { %1682 = sst [smem:[#allocation17_spill]] %s1314_s25  ;;  %p58_p1 = scmp.eq.s32.totalorder %s1427_s29, 0 }
  0x15   : > { %1683 = sst [smem:[#allocation18_spill]] %s1322_s27  ;;  %p83_p2 = scmp.ne.s32.totalorder %s1290_s19, %s1286_s18 }
  0x16   : > { %p148_p3 = scmp.ne.s32.totalorder %s1282_s17, %s1278_s16  ;;  %p1437_p4 = por %p58_p1, %p57_p0 }
  0x17   : > { %p149_p5 = scmp.eq.s32.totalorder %s1427_s29, 7  ;;  %p1444_p6 = por %p83_p2, %p58_p1 }
  0x18   : > { %p154_p7 = scmp.ne.s32.totalorder %s1278_s16, %s1274_s15  ;;  %p155_p9 = scmp.eq.s32.totalorder %s736_s30, 7 }
  0x19   : > { %p1450_p8 = por %p149_p5, %p148_p3  ;;  %p737_p10 = scmp.ge.s32.totalorder %s1326_s28, 1 }
  0x1a   : > { %p162_p11 = scmp.lt.s32.totalorder %s1326_s28, 9  ;;  %p1456_p12 = por %p155_p9, %p154_p7 }
  0x1b   : > { %s1686_s7 = scalar_select %p1450_p8, 1, 0 }
  0x1c   : > { %s1688_s8 = scalar_select %p1456_p12, 1, 0 }
  0x1d   : > { %1687 = sst [smem:[#allocation19_spill]] %s1686_s7  ;;  %p1460_p13 = pnand %p737_p10, %p162_p11 }
  0x1e   : > { %1689 = sst [smem:[#allocation20_spill]] %s1688_s8  ;;  %s1328_s13 = smov [#allocation8]  }
  0x1f   : > { %s1691_s3 = sld [smem:[#allocation27_spill]]  ;;  %p943_p0 = pneg %p1460_p13 }
  0x20   : > { %s178_s14 = sshll.u32 %s1328_s13, 4  ;;  %s1661_s18 = smov 64   ;;  %s179_s14 = int_to_ptr.vmem [resolvable:$true] %s178_s14 }
  0x21   : > { %p944_p2 = pnand %p943_p0, %p58_p1  ;;  %s1663_s21 = smov 4  }
  0x22   : > { %s32_s30 = sadd.s32 1, %s1318_s26  ;;  %s35_s10 = sadd.s32 1, %s1322_s27 }
  0x23   : > { %p33_p3 = scmp.ge.s32.totalorder %s32_s30, 2  ;;  %s44_s11 = sadd.s32 1, %s1306_s23 }
  0x24   : > { %p51_p5 = scmp.ne.s32.totalorder %s1306_s23, %s1302_s22  ;;  %p52_p7 = scmp.eq.s32.totalorder %s1326_s28, 0 }
  0x25   : > { %s176_s12 = sshll.u32 %s1691_s3, 4  ;;  %s1726_s30 = smov (%p33_p3, %s32_s30), 0  ;;  %s177_s12 = int_to_ptr.hbm [resolvable:$true] %s176_s12 }
  0x26   : > { %946 = dma.hbm_to_vmem [thread:$0]  (!%p944_p2), %s177_s12, 1024, %s179_s14, [#allocation7], %s1661_s18, %s1661_s18, %s1663_s21  }
  0x27   : > { %1692 = sst [smem:[#allocation21_spill]] %s1726_s30  ;;  %s1728_s10 = smov (!%p33_p3, %s35_s10), %s1322_s27 }
  0x28   : > { %s1485_s13 = ssub.s32 %s1318_s26, %s1726_s30  ;;  %p1489_p9 = por %p52_p7, %p51_p5 }
  0x29   : > { %p37_p10 = scmp.ge.s32.totalorder %s1728_s10, 4  ;;  %p68_p11 = scmp.eq.s32.totalorder %s1485_s13, 0 }
  0x2a   : > { %s138_s14 = sadd.s32 1, %s1282_s17  ;;  %p959_p0 = scmp.lt.s32.totalorder %s1326_s28, 8 }
  0x2b   : > { %s1730_s10 = smov (%p37_p10, %s1728_s10), 0  ;;  %s192_s18 = sand.u32 1, %s1306_s23  }
  0x2c   : > { %1694 = sst [smem:[#allocation22_spill]] %s1730_s10  ;;  %s839_s21 = sshll.u32 %s1322_s27, 4 }
  0x2d   : > { %s39_s3 = ssub.s32 %s1322_s27, %s1730_s10  ;;  %s740_s8 = sshll.u32 %s192_s18, 5 }
  0x2e   : > { %s41_s30 = sor.u32 %s1485_s13, %s39_s3  ;;  %p136_p2 = scmp.eq.s32.totalorder %s39_s3, 0 }
  0x2f   : > { %p42_p3 = scmp.eq.s32.totalorder %s41_s30, 0  ;;  %s201_s7 = sadd.s32 %s1318_s26, %s839_s21 }
  0x30   : > { %s1504_s15 = scalar_select %p136_p2, %s1282_s17, %s138_s14  }
  0x31   : > { %s1507_s4 = scalar_select %p42_p3, %s1306_s23, %s44_s11  }
  0x32   : > { %1695 = sst [smem:[#allocation23_spill]] %s1504_s15  ;;  %s743_s25 = sshll.u32 %s201_s7, 2 }
  0x33   : > { %1696 = sst [smem:[#allocation24_spill]] %s1507_s4  ;;  %s196_s2 = scalar_lea.vmem [#allocation3], %s740_s8 }
  0x34   : > { %s206_s10 = sshll.u32 %s196_s2, 4  ;;  %s1697_s0 = sld [smem:[#allocation25_spill]]  ;;  %s207_s10 = int_to_ptr.vmem [resolvable:$true] %s206_s10 }
  0x35   : > { %p948_p5 = pnand %p959_p0, %p1489_p9  ;;  %s193_s11 = scalar_lea.sflag [#allocation4], %s192_s18 }
  0x36   : > { %s1331_s4 = smov 128   ;;  %s1698_s23 = smov 4  }
  0x37   : > { %s1699_s21 = smov 64   ;;  %s216_s7 = sand.u32 1, %s1326_s28  }
  0x38   : > { %s70_s8 = sadd.s32 1, %s1294_s20  ;;  %p77_p10 = scmp.ne.s32.totalorder %s1294_s20, %s1290_s19 }
  0x39   : > { %s1526_s2 = scalar_select %p68_p11, %s1294_s20, %s70_s8  }
  0x3a   : > { %s203_s27 = scalar_lea.hbm %s1697_s0, %s743_s25  ;;  %p79_p2 = por %p77_p10, %p52_p7 }
  0x3b   : > { %s204_s14 = sshll.u32 %s203_s27, 4  ;;  %s218_s25 = sand.u32 1, %s1294_s20   ;;  %s205_s14 = int_to_ptr.hbm [resolvable:$true] %s204_s14 }
  0x3c   : > { %950 = dma.hbm_to_vmem [thread:$0]  (!%p948_p5), %s205_s14, 512, %s207_s10, %s193_s11, %s1331_s4, %s1699_s21, %s1698_s23  }
  0x3d   : > { %s840_s27 = sshll.u32 %s1318_s26, 6  ;;  %s744_s12 = sshll.u32 %s218_s25, 6 }
  0x3e   : > { %s225_s18 = scalar_lea.hbm %s1657_s1, %s840_s27  ;;  %s220_s15 = scalar_lea.vmem [#allocation6], %s744_s12 }
  0x3f   : > { %s226_s0 = sshll.u32 %s225_s18, 4  ;;  %s228_s17 = sshll.u32 %s220_s15, 4  ;;  %s227_s0 = int_to_ptr.hbm [resolvable:$true] %s226_s0  ;;  %s229_s17 = int_to_ptr.vmem [resolvable:$true] %s228_s17 }
  0x40   : > { %p951_p9 = pnand %p959_p0, %p79_p2  ;;  %s217_s4 = scalar_lea.sflag [#allocation7], %s216_s7 }
  0x41   : > { %240 = sbr.rel (%p1460_p13) target bundleno = 469 (0x1d5), region = 36  ;;  %s242_s10 = sand.u32 (!%p1460_p13), 1, %s1302_s22  }
  0x42   : > { %953 = dma.hbm_to_vmem [thread:$0]  (!%p951_p9), %s227_s0, 1024, %s229_s17, %s217_s4, %s1699_s21, %s1699_s21, %s1698_s23  }
  0x43   : > { %s748_s13 = sshll.u32 (!%p1460_p13), %s242_s10, 5  ;;  %s243_s14 = scalar_lea.sflag (!%p1460_p13), [#allocation4], %s242_s10 }
  0x44   : > { %s1543_s11 = scalar_lea.vmem (!%p1460_p13), [#allocation3], %s748_s13 }
  0x46   : > { %1257 = dma.done.wait (%p1437_p4), %s243_s14, 512  }
  0x47   : > { %1259 = vsyncadd (%p1437_p4), %s243_s14, 4294966784  ;;  %s252_s15 = sand.u32 1, %s1427_s29   ;;  %s254_s0 = sand.u32 1, %s1290_s19  }
  0x48   : > { %s749_s17 = sshll.u32 %s254_s0, 6  ;;  %s253_s23 = scalar_lea.sflag [#allocation7], %s252_s15 }
  0x49   : > { %s1551_s9 = scalar_lea.vmem [#allocation6], %s749_s17 }
  0x4a   : > { %1261 = dma.done.wait (%p1444_p6), %s253_s23, 1024  }
  0x4b   : > { %1263 = vsyncadd (%p1444_p6), %s253_s23, 4294966272 }
  0x4c   : > { %1265 = dma.done.wait (%p58_p1), [#allocation7], 1024  }
  0x4d   : > { %1267 = vsyncadd (%p58_p1), [#allocation7], 4294966272  ;;  %s289_s5 = sand.u32 1, %s1278_s16   ;;  %p752_p4 = scmp.ne.s32.totalorder %s1310_s24, 0 }
  0x4e   : > { %s751_s21 = sshll.u32 %s289_s5, 5 }
  0x4f   : > { %s1564_s7 = scalar_lea.vmem [#allocation9], %s751_s21  ;;  %298 = sbr.rel (%p752_p4) target bundleno = 93 (0x5d), region = 52 }
  0x54   : > { %v1332_v0 = vmov 0.0  }
  0x55   : > { %299 = vst [vmem:[#allocation2 + $0x30] sm:$0xff] %v1332_v0 }
  0x56   : > { %300 = vst [vmem:[#allocation2] sm:$0xff] %v1332_v0 }
  0x57   : > { %301 = vst [vmem:[#allocation2 + $0x18] sm:$0xff] %v1332_v0 }
  0x58   : > { %302 = vst [vmem:[#allocation2 + $0x10] sm:$0xff] %v1332_v0 }
  0x59   : > { %303 = vst [vmem:[#allocation2 + $0x8] sm:$0xff] %v1332_v0 }
  0x5a   : > { %304 = vst [vmem:[#allocation2 + $0x20] sm:$0xff] %v1332_v0 }
  0x5b   : > { %305 = vst [vmem:[#allocation2 + $0x28] sm:$0xff] %v1332_v0 }
  0x5c   : > { %306 = vst [vmem:[#allocation2 + $0x38] sm:$0xff] %v1332_v0 }
  0x5d PF: > { %v852_v1 = vld [vmem:[%s1551_s9 + $0x38] sm:$0xff]  ;;  %v851_v2 = vld [vmem:[%s1551_s9 + $0x30] sm:$0xff]  ;;  %v850_v3 = vld [vmem:[%s1551_s9 + $0x28] sm:$0xff]  ;;  %p801_p1 = scmp.ne.s32.totalorder %s1310_s24, 1 }
  0x5e   : > { %411 = vmatpush.bf16.msra.mxu0 %v852_v1  ;;  %885 = vmatpush.bf16.msra.mxu1 %v852_v1  ;;  %v849_v4 = vld [vmem:[%s1551_s9 + $0x20] sm:$0xff]  ;;  %v848_v5 = vld [vmem:[%s1551_s9 + $0x18] sm:$0xff]  ;;  %v847_v6 = vld [vmem:[%s1551_s9 + $0x10] sm:$0xff]  ;;  %s1700_s6 = sld [smem:[#allocation26_spill]] (!%p801_p1) }
  0x5f   : > { %886 = vmatpush.bf16.msra.mxu2 %v852_v1  ;;  %887 = vmatpush.bf16.msra.mxu3 %v852_v1  ;;  %v846_v7 = vld [vmem:[%s1551_s9 + $0x8] sm:$0xff]  ;;  %v845_v8 = vld [vmem:[%s1551_s9] sm:$0xff]  ;;  %v843_v11 = vld [vmem:[%s1543_s11 + $0x10] sm:$0xff] }
  0x60   : > { %v841_v9 = vld [vmem:[%s1543_s11] sm:$0xff]  ;;  %v842_v10 = vld [vmem:[%s1543_s11 + $0x8] sm:$0xff]  ;;  %v844_v12 = vld [vmem:[%s1543_s11 + $0x18] sm:$0xff] }
  0x61   : > { %v307_v13 = vld [vmem:[#allocation2 + $0x30] sm:$0xff]  ;;  %v309_v14 = vld [vmem:[#allocation2 + $0x18] sm:$0xff]  ;;  %v311_v19 = vld [vmem:[#allocation2 + $0x8] sm:$0xff] }
  0x62   : > { %412 = vmatpush.bf16.msra.mxu0 %v851_v2  ;;  %888 = vmatpush.bf16.msra.mxu1 %v851_v2  ;;  %v313_v20 = vld [vmem:[#allocation2 + $0x28] sm:$0xff]  ;;  %v308_v21 = vld [vmem:[#allocation2] sm:$0xff]  ;;  %v310_v22 = vld [vmem:[#allocation2 + $0x10] sm:$0xff] }
  0x63   : > { %889 = vmatpush.bf16.msra.mxu2 %v851_v2  ;;  %890 = vmatpush.bf16.msra.mxu3 %v851_v2  ;;  %v312_v31 = vld [vmem:[#allocation2 + $0x20] sm:$0xff]  ;;  %v314_v32 = vld [vmem:[#allocation2 + $0x38] sm:$0xff] }
  0x66   : > { %413 = vmatpush.bf16.msra.mxu0 %v850_v3  ;;  %891 = vmatpush.bf16.msra.mxu1 %v850_v3 }
  0x67   : > { %892 = vmatpush.bf16.msra.mxu2 %v850_v3  ;;  %893 = vmatpush.bf16.msra.mxu3 %v850_v3 }
  0x6a   : > { %414 = vmatpush.bf16.msra.mxu0 %v849_v4  ;;  %894 = vmatpush.bf16.msra.mxu1 %v849_v4 }
  0x6b   : > { %895 = vmatpush.bf16.msra.mxu2 %v849_v4  ;;  %896 = vmatpush.bf16.msra.mxu3 %v849_v4 }
  0x6e   : > { %415 = vmatpush.bf16.msra.mxu0 %v848_v5  ;;  %897 = vmatpush.bf16.msra.mxu1 %v848_v5 }
  0x6f   : > { %898 = vmatpush.bf16.msra.mxu2 %v848_v5  ;;  %899 = vmatpush.bf16.msra.mxu3 %v848_v5 }
  0x72   : > { %416 = vmatpush.bf16.msra.mxu0 %v847_v6  ;;  %900 = vmatpush.bf16.msra.mxu1 %v847_v6 }
  0x73   : > { %901 = vmatpush.bf16.msra.mxu2 %v847_v6  ;;  %902 = vmatpush.bf16.msra.mxu3 %v847_v6 }
  0x76   : > { %417 = vmatpush.bf16.msra.mxu0 %v846_v7  ;;  %903 = vmatpush.bf16.msra.mxu1 %v846_v7 }
  0x77   : > { %904 = vmatpush.bf16.msra.mxu2 %v846_v7  ;;  %905 = vmatpush.bf16.msra.mxu3 %v846_v7 }
  0x7a   : > { %418 = vmatpush.bf16.msra.mxu0 %v845_v8  ;;  %906 = vmatpush.bf16.msra.mxu1 %v845_v8 }
  0x7b   : > { %907 = vmatpush.bf16.msra.mxu2 %v845_v8  ;;  %908 = vmatpush.bf16.msra.mxu3 %v845_v8 }
  0x7d   : > { %419 = vmatmul.bf16.vlgmr.msra.gmra.mxu0 %v841_v9  ;;  %424 = vmatmul.bf16.vlgmr.msra.gmra.mxu1 %v842_v10 }
  0x7e   : > { %429 = vmatmul.bf16.vlgmr.msra.gmra.mxu2 %v843_v11  ;;  %434 = vmatmul.bf16.vlgmr.msra.gmra.mxu3 %v844_v12 }
  0xfa   : > { %v420_v15 = vpop.f32.mrf.mxu0  ;;  %v425_v16 = vpop.f32.mrf.mxu1 }
  0xfb   : > { %v440_v17 = vadd.f32 %v420_v15, %v307_v13  ;;  %v442_v18 = vadd.f32 %v425_v16, %v309_v14 }
  0xfd   : > { %448 = vst [vmem:[#allocation2 + $0x30] sm:$0xff] %v440_v17 }
  0xfe   : > { %450 = vst [vmem:[#allocation2 + $0x18] sm:$0xff] %v442_v18 }
 0x101   : > { %v430_v23 = vpop.f32.mrf.mxu2  ;;  %v435_v24 = vpop.f32.mrf.mxu3 }
 0x102   : > { %v444_v25 = vadd.f32 %v430_v23, %v311_v19  ;;  %v446_v26 = vadd.f32 %v435_v24, %v313_v20  ;;  %v422_v27 = vpop.f32.mrf.mxu0  ;;  %v427_v28 = vpop.f32.mrf.mxu1 }
 0x103   : > { %v441_v29 = vadd.f32 %v422_v27, %v308_v21  ;;  %v443_v30 = vadd.f32 %v427_v28, %v310_v22 }
 0x104   : > { %452 = vst [vmem:[#allocation2 + $0x8] sm:$0xff] %v444_v25 }
 0x105   : > { %454 = vst [vmem:[#allocation2 + $0x28] sm:$0xff] %v446_v26 }
 0x106   : > { %449 = vst [vmem:[#allocation2] sm:$0xff] %v441_v29 }
 0x107   : > { %451 = vst [vmem:[#allocation2 + $0x10] sm:$0xff] %v443_v30 }
 0x109   : > { %v432_v33 = vpop.f32.mrf.mxu2  ;;  %v437_v34 = vpop.f32.mrf.mxu3  ;;  %459 = sbr.rel (%p801_p1) target bundleno = 447 (0x1bf), region = 56 }
 0x10a   : > { %v445_v35 = vadd.f32 %v432_v33, %v312_v31  ;;  %v447_v36 = vadd.f32 %v437_v34, %v314_v32 }
 0x10c   : > { %453 = vst [vmem:[#allocation2 + $0x20] sm:$0xff] %v445_v35 }
 0x10d   : > { %455 = vst [vmem:[#allocation2 + $0x38] sm:$0xff] %v447_v36 }
 0x10e   : > { %v860_v37 = vld [vmem:[#allocation8 + $0x38] sm:$0xff]  ;;  %v859_v38 = vld [vmem:[#allocation8 + $0x30] sm:$0xff]  ;;  %v858_v39 = vld [vmem:[#allocation8 + $0x28] sm:$0xff] }
 0x10f   : > { %556 = vmatpush.bf16.msra.mxu0 %v860_v37  ;;  %909 = vmatpush.bf16.msra.mxu1 %v860_v37  ;;  %v857_v40 = vld [vmem:[#allocation8 + $0x20] sm:$0xff]  ;;  %v856_v41 = vld [vmem:[#allocation8 + $0x18] sm:$0xff]  ;;  %v855_v43 = vld [vmem:[#allocation8 + $0x10] sm:$0xff] }
 0x110   : > { %910 = vmatpush.bf16.msra.mxu2 %v860_v37  ;;  %911 = vmatpush.bf16.msra.mxu3 %v860_v37  ;;  %v1081_v42 = vld [vmem:[%s1700_s6] ss:$0 sm:$0xff]  ;;  %v460_v44 = vld [vmem:[#allocation2 + $0x30] sm:$0xff]  ;;  %v462_v46 = vld [vmem:[#allocation2 + $0x18] sm:$0xff] }
 0x111   : > { %v461_v45 = vld [vmem:[#allocation2] sm:$0xff]  ;;  %v463_v47 = vld [vmem:[#allocation2 + $0x10] sm:$0xff]  ;;  %v464_v48 = vld [vmem:[#allocation2 + $0x8] sm:$0xff]  ;;  %v472_v52 = vadd.f32 %v1081_v42, %v460_v44  ;;  %v474_v54 = vadd.f32 %v1081_v42, %v462_v46 }
 0x112   : > { %v466_v50 = vld [vmem:[#allocation2 + $0x28] sm:$0xff]  ;;  %v473_v53 = vadd.f32 %v1081_v42, %v461_v45  ;;  %v475_v55 = vadd.f32 %v1081_v42, %v463_v47  ;;  %v476_v56 = vadd.f32 %v1081_v42, %v464_v48  ;;  %v853_v1 = vld [vmem:[#allocation8] sm:$0xff] }
 0x113   : > { %557 = vmatpush.bf16.msra.mxu0 %v859_v38  ;;  %912 = vmatpush.bf16.msra.mxu1 %v859_v38  ;;  %v465_v49 = vld [vmem:[#allocation2 + $0x20] sm:$0xff]  ;;  %v854_v57 = vld [vmem:[#allocation8 + $0x8] sm:$0xff]  ;;  %v478_v59 = vadd.f32 %v1081_v42, %v466_v50  ;;  %v480_v61 = vmax.f32 %v472_v52, 0.0  ;;  %v482_v63 = vmax.f32 %v474_v54, 0.0 }
 0x114   : > { %913 = vmatpush.bf16.msra.mxu2 %v859_v38  ;;  %914 = vmatpush.bf16.msra.mxu3 %v859_v38  ;;  %v467_v51 = vld [vmem:[#allocation2 + $0x38] sm:$0xff]  ;;  %v477_v58 = vadd.f32 %v1081_v42, %v465_v49  ;;  %v481_v62 = vmax.f32 %v473_v53, 0.0  ;;  %v483_v0 = vmax.f32 %v475_v55, 0.0  ;;  %v484_v2 = vmax.f32 %v476_v56, 0.0 }
 0x115   : > { %v479_v60 = vadd.f32 %v1081_v42, %v467_v51  ;;  %v486_v4 = vmax.f32 %v478_v59, 0.0 }
 0x116   : > { %v485_v3 = vmax.f32 %v477_v58, 0.0  ;;  %v488_v6 = vpack.c.bf16 %v481_v62, %v480_v61  ;;  %v489_v7 = vpack.c.bf16 %v483_v0, %v482_v63 }
 0x117   : > { %558 = vmatpush.bf16.msra.mxu0 %v858_v39  ;;  %915 = vmatpush.bf16.msra.mxu1 %v858_v39  ;;  %v487_v5 = vmax.f32 %v479_v60, 0.0 }
 0x118   : > { %916 = vmatpush.bf16.msra.mxu2 %v858_v39  ;;  %917 = vmatpush.bf16.msra.mxu3 %v858_v39  ;;  %v490_v8 = vpack.c.bf16 %v485_v3, %v484_v2 }
 0x119   : > { %v491_v9 = vpack.c.bf16 %v487_v5, %v486_v4 }
 0x11b   : > { %559 = vmatpush.bf16.msra.mxu0 %v857_v40  ;;  %918 = vmatpush.bf16.msra.mxu1 %v857_v40 }
 0x11c   : > { %919 = vmatpush.bf16.msra.mxu2 %v857_v40  ;;  %920 = vmatpush.bf16.msra.mxu3 %v857_v40 }
 0x11f   : > { %560 = vmatpush.bf16.msra.mxu0 %v856_v41  ;;  %921 = vmatpush.bf16.msra.mxu1 %v856_v41 }
 0x120   : > { %922 = vmatpush.bf16.msra.mxu2 %v856_v41  ;;  %923 = vmatpush.bf16.msra.mxu3 %v856_v41 }
 0x123   : > { %561 = vmatpush.bf16.msra.mxu0 %v855_v43  ;;  %924 = vmatpush.bf16.msra.mxu1 %v855_v43 }
 0x124   : > { %925 = vmatpush.bf16.msra.mxu2 %v855_v43  ;;  %926 = vmatpush.bf16.msra.mxu3 %v855_v43 }
 0x127   : > { %562 = vmatpush.bf16.msra.mxu0 %v854_v57  ;;  %927 = vmatpush.bf16.msra.mxu1 %v854_v57 }
 0x128   : > { %928 = vmatpush.bf16.msra.mxu2 %v854_v57  ;;  %929 = vmatpush.bf16.msra.mxu3 %v854_v57 }
 0x12b   : > { %563 = vmatpush.bf16.msra.mxu0 %v853_v1  ;;  %930 = vmatpush.bf16.msra.mxu1 %v853_v1 }
 0x12c   : > { %931 = vmatpush.bf16.msra.mxu2 %v853_v1  ;;  %932 = vmatpush.bf16.msra.mxu3 %v853_v1 }
 0x12e   : > { %564 = vmatmul.bf16.vlgmr.msra.gmra.mxu0 %v488_v6  ;;  %569 = vmatmul.bf16.vlgmr.msra.gmra.mxu1 %v489_v7 }
 0x12f   : > { %574 = vmatmul.bf16.vlgmr.msra.gmra.mxu2 %v490_v8  ;;  %579 = vmatmul.bf16.vlgmr.msra.gmra.mxu3 %v491_v9 }
 0x1ab   : > { %v565_v10 = vpop.f32.mrf.mxu0  ;;  %v570_v11 = vpop.f32.mrf.mxu1 }
 0x1b2   : > { %v575_v12 = vpop.f32.mrf.mxu2  ;;  %v580_v13 = vpop.f32.mrf.mxu3 }
 0x1b3   : > { %v567_v14 = vpop.f32.mrf.mxu0  ;;  %v572_v15 = vpop.f32.mrf.mxu1 }
 0x1b4   : > { %v865_v16 = vpack.c.bf16 %v567_v14, %v565_v10  ;;  %v870_v17 = vpack.c.bf16 %v572_v15, %v570_v11 }
 0x1b6   : > { %866 = vst [vmem:[%s1564_s7] sm:$0xff] %v865_v16  }
 0x1b7   : > { %882 = vst [vmem:[%s1564_s7 + $0x8] sm:$0xff] %v870_v17  }
 0x1ba   : > { %v577_v18 = vpop.f32.mrf.mxu2  ;;  %v582_v19 = vpop.f32.mrf.mxu3 }
 0x1bb   : > { %v875_v20 = vpack.c.bf16 %v577_v18, %v575_v12  ;;  %v880_v21 = vpack.c.bf16 %v582_v19, %v580_v13 }
 0x1bd   : > { %883 = vst [vmem:[%s1564_s7 + $0x10] sm:$0xff] %v875_v20  }
 0x1be   : > { %884 = vst [vmem:[%s1564_s7 + $0x18] sm:$0xff] %v880_v21  }
 0x1bf PF: > { %s1701_s8 = sld [smem:[#allocation17_spill]]  ;;  %s614_s4 = sshll.u32 %s1564_s7, 4  ;;  %s615_s4 = int_to_ptr.vmem [resolvable:$true] %s614_s4 }
 0x1c0   : > { %s1703_s30 = sld [smem:[#allocation28_spill]]  ;;  %s602_s13 = scalar_lea.sflag [#allocation5], %s289_s5 }
 0x1c5   : > { %s861_s27 = sshll.u32 %s1701_s8, 5 }
 0x1c6   : > { %s613_s18 = scalar_lea.hbm %s1703_s30, %s861_s27  ;;  %s1192_s17 = scalar_lea.hbm %s1703_s30, 128 }
 0x1c7   : > { %s616_s10 = sshll.u32 %s613_s18, 4  ;;  %s617_s10 = int_to_ptr.hbm [resolvable:$true] %s616_s10 }
 0x1c8   : > { %s1186_s14 = sshra.s32 %s617_s10, 4  ;;  %s1187_s14 = int_to_ptr.hbm [resolvable:$true] %s1186_s14 }
 0x1c9   : > { %s1188_s11 = scalar_lea.hbm %s1187_s14, 32  ;;  %p1193_p11 = scmp.lt.s32.totalorder %s1187_s14, %s1703_s30 }
 0x1ca   : > { %p1189_p6 = scmp.ne.s32.totalorder %s1187_s14, %s1188_s11  ;;  %p1194_p0 = scmp.lt.s32.totalorder %s1192_s17, %s1188_s11 }
 0x1cc   : > { %p1190_p13 = pnand %p1189_p6, %p1450_p8  ;;  %p1195_p3 = por %p1194_p0, %p1193_p11 }
 0x1ce   : > { %p1191_p7 = pneg %p1190_p13 }
 0x1d0   : > { %p1196_p5 = pnand %p1195_p3, %p1191_p7 }
 0x1d2   : > { %1199 = shalt.err (!%p1196_p5)
}
 0x1d3   : > { %s1333_s5 = smov 64   ;;  %s1334_s21 = smov 4  }
 0x1d4   : > { %941 = dma.vmem_to_hbm [thread:$0]  (%p1450_p8), %s615_s4, 512, %s617_s10, %s602_s13, %s1333_s5, %s1333_s5, %s1334_s21  }
 0x1d5 PF: > { %s1704_s7 = sld [smem:[#allocation14_spill]]  ;;  %p961_p10 = scmp.ge.s32.totalorder %s1326_s28, 2 }
 0x1d7   : > { %p955_p2 = pnand %p961_p10, %p1456_p12 }
 0x1d9   : > { %p956_p9 = pneg %p955_p2 }
 0x1db   : > { %s631_s29 = sand.u32 1, %s1704_s7  }
 0x1dc   : > { %s632_s6 = scalar_lea.sflag [#allocation5], %s631_s29 }
 0x1dd   : > { %1269 = dma.done.wait (%p956_p9), %s632_s6, 512  }
 0x1de   : > { %1271 = vsyncadd (%p956_p9), %s632_s6, 4294966784  ;;  %s23_s28 = sadd.s32 1, %s1326_s28   ;;  %s1707_s25 = sld [smem:[#allocation15_spill]] }
 0x1df   : > { %p1609_p4 = scmp.ge.s32.totalorder %s23_s28, 10   ;;  %s1708_s17 = sld [smem:[#allocation23_spill]] }
 0x1e0   : > { %s1709_s27 = sld [smem:[#allocation16_spill]]  ;;  %s1714_s15 = smov %s1278_s16 }
 0x1e1   : > { %s1710_s23 = sld [smem:[#allocation24_spill]]  ;;  %s1716_s18 = smov %s1290_s19 }
 0x1e2   : > { %s1711_s12 = sld [smem:[#allocation18_spill]]  ;;  %s1717_s19 = smov %s1294_s20 }
 0x1e3   : > { %s1712_s3 = sld [smem:[#allocation21_spill]]  ;;  %s1718_s20 = smov %s1526_s2 }
 0x1e4   : > { %s1713_s4 = sld [smem:[#allocation22_spill]]  ;;  %s1715_s16 = smov %s1707_s25 }
 0x1e5   : > { %s1719_s21 = smov %s1302_s22  ;;  %s1721_s24 = smov %s1318_s26 }
 0x1e6   : > { %s1720_s22 = smov %s1709_s27  ;;  %22 = sbr.rel (!%p1609_p4) target bundleno = 17 (0x11), region = 106 }
 0x1e8   : > { %s1722_s25 = smov %s1711_s12 }
 0x1e9   : > { %s1723_s26 = smov %s1712_s3 }
 0x1ea   : > { %s1724_s27 = smov %s1713_s4 }
 0x1eb   :  { %638 = vsyncpa [#allocation4], 1 }
 0x1ec   :  { %640 = vsyncpa [#allocation4 + $0x1], 1 }
 0x1ed   :  { %641 = vsyncpa [#allocation7], 1 }
 0x1ee   :  { %643 = vsyncpa [#allocation7 + $0x1], 1 }
 0x1ef   :  { %644 = vsyncpa [#allocation5], 1 }
 0x1f0   :  { %646 = vsyncpa [#allocation5 + $0x1], 1 }

</bundles_post_ra>
